<compile_context>
chip_gen: v6e
topology: v6e:2x2x1
jax: 0.10.0
libtpu: 0.0.40
codegen_flags: <defaults>
</compile_context>

<pallas_src>
import jax
import jax.numpy as jnp
from jax.experimental import pallas as pl
from jax.experimental.pallas import tpu as pltpu


def skillnet_kernel(x_ref, w1_ref, b1_ref, w2_ref, b2_ref, w3_ref, b3_ref, o_ref):
    # One batch tile (on lanes) per grid step; all weights are VMEM-resident.
    x = x_ref[...]                                                    # (3, tb)
    h = jnp.dot(w1_ref[...], x, preferred_element_type=jnp.float32) + b1_ref[...]
    h = jnp.maximum(h, 0.0)                                           # ReLU
    h = jnp.dot(w2_ref[...], h, preferred_element_type=jnp.float32) + b2_ref[...]
    h = jnp.maximum(h, 0.0)                                           # ReLU
    o_ref[...] = jnp.dot(w3_ref[...], h, preferred_element_type=jnp.float32) + b3_ref[...]


def _round_up(n, m):
    return ((n + m - 1) // m) * m


def skillnet_forward_featmajor(xt, params, *, block_batch=32768):
    """Feature-major entry point. xt: (3, B) float32. Returns (45, B) float32."""
    w1, b1, w2, b2, w3, b3 = params
    d_in, B = xt.shape
    d_out = w3.shape[0]

    # Tile selection: minimize tail padding for this particular B instead of
    # padding B up to a full multiple of a fixed tile; when everything fits in
    # one step, still emit >= 2 steps (for non-tiny B) so v7x's two
    # TensorCores can split the 'parallel' batch axis.
    n_steps = pl.cdiv(B, block_batch)
    if n_steps == 1 and B >= 256:
        n_steps = 2
    tb = max(128, _round_up(pl.cdiv(B, n_steps), 128))   # lane-axis tile, %128
    b_pad = n_steps * tb
    if b_pad != B:
        xt = jnp.pad(xt, ((0, 0), (0, b_pad - B)))       # junk cols sliced off below

    # Weights/biases: constant index_map -> one full block, VMEM-resident.
    resident = lambda a: pl.BlockSpec(a.shape, lambda i: (0, 0))

    out_t = pl.pallas_call(
        skillnet_kernel,
        out_shape=jax.ShapeDtypeStruct((d_out, b_pad), jnp.float32),
        grid=(n_steps,),
        in_specs=[
            pl.BlockSpec((d_in, tb), lambda i: (0, i)),   # x: batch tiled on lanes
            resident(w1), resident(b1),
            resident(w2), resident(b2),
            resident(w3), resident(b3),
        ],
        out_specs=pl.BlockSpec((d_out, tb), lambda i: (0, i)),
        compiler_params=pltpu.CompilerParams(
            dimension_semantics=("parallel",),            # megacore-shardable batch axis
            vmem_limit_bytes=32 * 1024 * 1024,            # don't let v5e's 16 MiB default bite
        ),
    )(xt, w1, b1, w2, b2, w3, b3)

    return out_t[:, :B] if b_pad != B else out_t


def skillnet_forward(x, params, *, block_batch=32768):
    """PyTorch-convention entry point. x: (B, 3) float32 -> (B, 45) float32."""
    # TODO(synk): for the full input-side DMA win, have the producer supply x
    # as (3, B) and call skillnet_forward_featmajor directly (no transposes).
    out_t = skillnet_forward_featmajor(x.T, params, block_batch=block_batch)
    return out_t.T


def init_params(key):
    """Deterministic init mirroring nn.Linear.

    Weights are stored in PyTorch's native (out_features, in_features) layout
    and biases as (out_features, 1) columns, matching the feature-major kernel
    (out_t = W @ x_t + b). Uses nn.Linear's U(-1/sqrt(fan_in), 1/sqrt(fan_in)).
    """
    def linear(k, fan_in, fan_out):
        kw, kb = jax.random.split(k)
        bound = 1.0 / jnp.sqrt(float(fan_in))
        w = jax.random.uniform(kw, (fan_out, fan_in), jnp.float32, -bound, bound)
        b = jax.random.uniform(kb, (fan_out, 1), jnp.float32, -bound, bound)
        return w, b

    k1, k2, k3 = jax.random.split(key, 3)
    w1, b1 = linear(k1, 3, 30)
    w2, b2 = linear(k2, 30, 30)
    w3, b3 = linear(k3, 30, 45)
    return (w1, b1, w2, b2, w3, b3)


def reference_forward(x, params):
    """Pure-JAX reference of SkillNet.forward (PyTorch convention, x: (B, 3))."""
    w1, b1, w2, b2, w3, b3 = params
    h = jnp.maximum(x @ w1.T + b1[:, 0], 0.0)
    h = jnp.maximum(h @ w2.T + b2[:, 0], 0.0)
    return h @ w3.T + b3[:, 0]


if __name__ == "__main__":
    key = jax.random.PRNGKey(0)
    k_x, k_x2, k_x3, k_p = jax.random.split(key, 4)
    params = init_params(k_p)

    # Small-batch check (single 128-lane tile, batch padded on the lane axis).
    B = 8
    x = jax.random.normal(k_x, (B, 3), dtype=jnp.float32)
    out = jax.block_until_ready(skillnet_forward(x, params))
    ref = reference_forward(x, params)
    assert out.shape == (B, 45)
    assert jnp.allclose(out, ref, atol=1e-5, rtol=1e-5)

    # Multi-tile + ragged-remainder check (3 grid steps, padded last tile).
    B2 = 300
    x2 = jax.random.normal(k_x2, (B2, 3), dtype=jnp.float32)
    out2 = jax.block_until_ready(skillnet_forward(x2, params, block_batch=128))
    ref2 = reference_forward(x2, params)
    assert out2.shape == (B2, 45)
    assert jnp.allclose(out2, ref2, atol=1e-5, rtol=1e-5)

    # Forced >=2-step path (B fits in one block_batch tile but is split in two
    # so v7x's second TensorCore gets work); also exercises the feature-major
    # entry point directly.
    B3 = 512
    x3t = jax.random.normal(k_x3, (3, B3), dtype=jnp.float32)
    out3t = jax.block_until_ready(skillnet_forward_featmajor(x3t, params))
    ref3 = reference_forward(x3t.T, params)
    assert out3t.shape == (45, B3)
    assert jnp.allclose(out3t.T, ref3, atol=1e-5, rtol=1e-5)

    print("KERNEL_OK")
</pallas_src>

<mosaic_0001>
module attributes {stable_mosaic.version = 11 : i64} {
  func.func @skillnet_kernel(%arg0: i32, %arg1: memref<3x128xf32, #tpu.memory_space<vmem>>, %arg2: memref<30x3xf32, #tpu.memory_space<vmem>>, %arg3: memref<30x1xf32, #tpu.memory_space<vmem>>, %arg4: memref<30x30xf32, #tpu.memory_space<vmem>>, %arg5: memref<30x1xf32, #tpu.memory_space<vmem>>, %arg6: memref<45x30xf32, #tpu.memory_space<vmem>>, %arg7: memref<45x1xf32, #tpu.memory_space<vmem>>, %arg8: memref<45x128xf32, #tpu.memory_space<vmem>>) attributes {dimension_semantics = [#tpu.dimension_semantics<parallel>], iteration_bounds = array<i64: 1>, scalar_prefetch = 0 : i64, scratch_operands = 0 : i64, tpu.core_type = #tpu.core_type<tc>, window_params = [{transform_indices = @transform_0, window_bounds = array<i64: 3, 128>}, {pipeline_mode = #tpu.pipeline_mode<synchronous>, transform_indices = @transform_1, window_bounds = array<i64: 30, 3>}, {pipeline_mode = #tpu.pipeline_mode<synchronous>, transform_indices = @transform_2, window_bounds = array<i64: 30, 1>}, {pipeline_mode = #tpu.pipeline_mode<synchronous>, transform_indices = @transform_3, window_bounds = array<i64: 30, 30>}, {pipeline_mode = #tpu.pipeline_mode<synchronous>, transform_indices = @transform_4, window_bounds = array<i64: 30, 1>}, {pipeline_mode = #tpu.pipeline_mode<synchronous>, transform_indices = @transform_5, window_bounds = array<i64: 45, 30>}, {pipeline_mode = #tpu.pipeline_mode<synchronous>, transform_indices = @transform_6, window_bounds = array<i64: 45, 1>}, {transform_indices = @transform_7, window_bounds = array<i64: 45, 128>}]} {
    %c0 = arith.constant 0 : index
    %c0_0 = arith.constant 0 : index
    %0 = vector.load %arg1[%c0, %c0_0] : memref<3x128xf32, #tpu.memory_space<vmem>>, vector<3x128xf32>
    %c0_1 = arith.constant 0 : index
    %c0_2 = arith.constant 0 : index
    %1 = vector.load %arg2[%c0_1, %c0_2] : memref<30x3xf32, #tpu.memory_space<vmem>>, vector<30x3xf32>
    %cst = arith.constant dense<0.000000e+00> : vector<30x128xf32>
    %2 = tpu.matmul %1, %0, %cst {dimension_numbers = #tpu.dot_dimension_numbers<[1], [0], [0], [1], [0, 0, 1, 1], [], []>} : vector<30x3xf32>, vector<3x128xf32>, vector<30x128xf32> -> vector<30x128xf32>
    %c0_3 = arith.constant 0 : index
    %c0_4 = arith.constant 0 : index
    %3 = vector.load %arg3[%c0_3, %c0_4] : memref<30x1xf32, #tpu.memory_space<vmem>>, vector<30x1xf32>
    %4 = vector.broadcast %3 : vector<30x1xf32> to vector<30x128xf32>
    %5 = arith.addf %2, %4 : vector<30x128xf32>
    %cst_5 = arith.constant 0.000000e+00 : f32
    %6 = vector.broadcast %cst_5 : f32 to vector<30x128xf32>
    %7 = arith.maximumf %5, %6 : vector<30x128xf32>
    %c0_6 = arith.constant 0 : index
    %c0_7 = arith.constant 0 : index
    %8 = vector.load %arg4[%c0_6, %c0_7] : memref<30x30xf32, #tpu.memory_space<vmem>>, vector<30x30xf32>
    %cst_8 = arith.constant dense<0.000000e+00> : vector<30x128xf32>
    %9 = tpu.matmul %8, %7, %cst_8 {dimension_numbers = #tpu.dot_dimension_numbers<[1], [0], [0], [1], [0, 0, 1, 1], [], []>} : vector<30x30xf32>, vector<30x128xf32>, vector<30x128xf32> -> vector<30x128xf32>
    %c0_9 = arith.constant 0 : index
    %c0_10 = arith.constant 0 : index
    %10 = vector.load %arg5[%c0_9, %c0_10] : memref<30x1xf32, #tpu.memory_space<vmem>>, vector<30x1xf32>
    %11 = vector.broadcast %10 : vector<30x1xf32> to vector<30x128xf32>
    %12 = arith.addf %9, %11 : vector<30x128xf32>
    %cst_11 = arith.constant 0.000000e+00 : f32
    %13 = vector.broadcast %cst_11 : f32 to vector<30x128xf32>
    %14 = arith.maximumf %12, %13 : vector<30x128xf32>
    %c0_12 = arith.constant 0 : index
    %c0_13 = arith.constant 0 : index
    %15 = vector.load %arg6[%c0_12, %c0_13] : memref<45x30xf32, #tpu.memory_space<vmem>>, vector<45x30xf32>
    %cst_14 = arith.constant dense<0.000000e+00> : vector<45x128xf32>
    %16 = tpu.matmul %15, %14, %cst_14 {dimension_numbers = #tpu.dot_dimension_numbers<[1], [0], [0], [1], [0, 0, 1, 1], [], []>} : vector<45x30xf32>, vector<30x128xf32>, vector<45x128xf32> -> vector<45x128xf32>
    %c0_15 = arith.constant 0 : index
    %c0_16 = arith.constant 0 : index
    %17 = vector.load %arg7[%c0_15, %c0_16] : memref<45x1xf32, #tpu.memory_space<vmem>>, vector<45x1xf32>
    %18 = vector.broadcast %17 : vector<45x1xf32> to vector<45x128xf32>
    %19 = arith.addf %16, %18 : vector<45x128xf32>
    %c0_17 = arith.constant 0 : index
    %c0_18 = arith.constant 0 : index
    %20 = vector.load %arg8[%c0_17, %c0_18] : memref<45x128xf32, #tpu.memory_space<vmem>>, vector<45x128xf32>
    tpu.vector_store %arg8[%c0_17, %c0_18], %19 {strides = array<i32>} : memref<45x128xf32, #tpu.memory_space<vmem>>, vector<45x128xf32>,
    return
  }
  func.func @transform_0(%arg0: i32) -> (i32, i32) {
    %c0_i32 = arith.constant 0 : i32
    %c0_i32_0 = arith.constant 0 : i32
    return %c0_i32, %arg0 : i32, i32
  }
  func.func @transform_1(%arg0: i32) -> (i32, i32) {
    %c0_i32 = arith.constant 0 : i32
    %c0_i32_0 = arith.constant 0 : i32
    %c0_i32_1 = arith.constant 0 : i32
    return %c0_i32, %c0_i32_0 : i32, i32
  }
  func.func @transform_2(%arg0: i32) -> (i32, i32) {
    %c0_i32 = arith.constant 0 : i32
    %c0_i32_0 = arith.constant 0 : i32
    %c0_i32_1 = arith.constant 0 : i32
    return %c0_i32, %c0_i32_0 : i32, i32
  }
  func.func @transform_3(%arg0: i32) -> (i32, i32) {
    %c0_i32 = arith.constant 0 : i32
    %c0_i32_0 = arith.constant 0 : i32
    %c0_i32_1 = arith.constant 0 : i32
    return %c0_i32, %c0_i32_0 : i32, i32
  }
  func.func @transform_4(%arg0: i32) -> (i32, i32) {
    %c0_i32 = arith.constant 0 : i32
    %c0_i32_0 = arith.constant 0 : i32
    %c0_i32_1 = arith.constant 0 : i32
    return %c0_i32, %c0_i32_0 : i32, i32
  }
  func.func @transform_5(%arg0: i32) -> (i32, i32) {
    %c0_i32 = arith.constant 0 : i32
    %c0_i32_0 = arith.constant 0 : i32
    %c0_i32_1 = arith.constant 0 : i32
    return %c0_i32, %c0_i32_0 : i32, i32
  }
  func.func @transform_6(%arg0: i32) -> (i32, i32) {
    %c0_i32 = arith.constant 0 : i32
    %c0_i32_0 = arith.constant 0 : i32
    %c0_i32_1 = arith.constant 0 : i32
    return %c0_i32, %c0_i32_0 : i32, i32
  }
  func.func @transform_7(%arg0: i32) -> (i32, i32) {
    %c0_i32 = arith.constant 0 : i32
    %c0_i32_0 = arith.constant 0 : i32
    return %c0_i32, %arg0 : i32, i32
  }
}

</mosaic_0001>

<bundles_post_ra>
// kernel: tpu_custom_call.1
= control target key start
LH: loop header
LB: loop body
LE: loop exit
PB: predicated region body
PF: predicated region fallthrough
CT: control target
= control target key end

     0   :  { %vm69_vm0 = vcmask 1042432   ;;  %vm56_vm1 = vcmask 23552   ;;  %v583_v5 = vmov 0   ;;  %s735_s0 = inlined_call_operand.vmem [shape: f32[3,128], index: 0, kind: input, shape index: {}]   ;;  %s736_s1 = inlined_call_operand.vmem [shape: f32[30,3], index: 1, kind: input, shape index: {}]   ;;  %s737_s2 = inlined_call_operand.vmem [shape: f32[30,1], index: 2, kind: input, shape index: {}]   ;;  %s738_s3 = inlined_call_operand.vmem [shape: f32[30,30], index: 3, kind: input, shape index: {}]   ;;  %s739_s4 = inlined_call_operand.vmem [shape: f32[30,1], index: 4, kind: input, shape index: {}]   ;;  %s740_s5 = inlined_call_operand.vmem [shape: f32[45,30], index: 5, kind: input, shape index: {}]   ;;  %s741_s6 = inlined_call_operand.vmem [shape: f32[45,1], index: 6, kind: input, shape index: {}]   ;;  %s742_s7 = inlined_call_operand.hbm [shape: f32[45,128], index: 7, kind: output, shape index: {}]  }
   0x1   :  { %v27_v0 = vld [vmem:[%s735_s0] sm:$0x7]  ;;  %v29_v2 = vld [vmem:[%s736_s1 + $0x8] sm:$0xff]  ;;  %v30_v3 = vld [vmem:[%s736_s1 + $0x10] sm:$0xff]  ;;  %559 = vset.pattern.permute.xlu0 %v583_v5  ;;  %560 = vset.pattern.permute.xlu1 %v583_v5 }
   0x2   :  { %v28_v1 = vld [vmem:[%s736_s1] sm:$0xff]  ;;  %516 = vmatprep.subr.msk.mxu1 %vm69_vm0, %v27_v0  ;;  %v35_v4 = vld [vmem:[%s737_s2 + $0x18] sm:$0x3f]  ;;  %v33_v6 = vld [vmem:[%s737_s2 + $0x8] sm:$0xff] }
   0x3   :  { %518 = vmatprep.mubr.msk.f32.mxu1 %vm56_vm1, %v28_v1  ;;  %517 = vmatpush3.msk.msra.mxu1 %vm69_vm0, %v27_v0  ;;  %v31_v7 = vld [vmem:[%s736_s1 + $0x18] sm:$0x3f]  ;;  %v34_v8 = vld [vmem:[%s737_s2 + $0x10] sm:$0xff]  ;;  %v32_v9 = vld [vmem:[%s737_s2] sm:$0xff] }
   0x4   :  { %519 = vmatmul.mubr.msk.f32.vlgmr.msra.gmra.mxu1 %vm56_vm1, %v29_v2  ;;  %53 = vperm.xlu0 %559, %v35_v4  }
   0x5   :  { %521 = vmatprep.mubr.msk.f32.mxu1 %vm56_vm1, %v30_v3  ;;  %43 = vperm.xlu1 %560, %v33_v6  }
   0x6   :  { %12 = vsyncpa [#allocation3], 0  ;;  %v169_v10 = vld [vmem:[%s739_s4 + $0x18] sm:$0x3f]  ;;  %v168_v11 = vld [vmem:[%s739_s4 + $0x10] sm:$0xff]  ;;  %vm190_vm2 = vcmask 244736  }
   0x7   :  { %v167_v12 = vld [vmem:[%s739_s4 + $0x8] sm:$0xff]  ;;  %v166_v13 = vld [vmem:[%s739_s4] sm:$0xff]  ;;  %v304_v16 = vld [vmem:[%s741_s6 + $0x10] sm:$0xff]  ;;  %vm203_vm3 = vcmask 1045504   ;;  %s584_s27 = smov [#allocation2]  }
   0x8   :  { %522 = vmatmul.mubr.msk.f32.gmra.mxu1 %vm56_vm1, %v31_v7  ;;  %48 = vperm.xlu0 %559, %v34_v8   ;;  %v302_v14 = vld [vmem:[%s741_s6] sm:$0xff]  ;;  %v303_v15 = vld [vmem:[%s741_s6 + $0x8] sm:$0xff]  ;;  %v305_v17 = vld [vmem:[%s741_s6 + $0x18] sm:$0xff]  ;;  %s465_s28 = sshll.u32 %s584_s27, 4  ;;  %s466_s28 = int_to_ptr.vmem [resolvable:$true] %s465_s28 }
   0x9   :  { %38 = vperm.xlu1 %560, %v32_v9   ;;  %v306_v18 = vld [vmem:[%s741_s6 + $0x20] sm:$0xff]  ;;  %v307_v19 = vld [vmem:[%s741_s6 + $0x28] sm:$0x1f]  ;;  %v164_v38 = vld [vmem:[%s738_s3 + $0x10] sm:$0xff]  ;;  %p566_p1 = scmp.lt.s32.totalorder %s466_s28, %s466_s28 }
   0xa   :  { %v162_v20 = vld [vmem:[%s738_s3] sm:$0xff]  ;;  %v163_v37 = vld [vmem:[%s738_s3 + $0x8] sm:$0xff]  ;;  %v165_v39 = vld [vmem:[%s738_s3 + $0x18] sm:$0x3f] }
   0xb   :  { %532 = vmatprep.mubr.msk.f32.mxu1 %vm190_vm2, %v162_v20  ;;  %v296_v40 = vld [vmem:[%s740_s5] sm:$0xff]  ;;  %v297_v57 = vld [vmem:[%s740_s5 + $0x8] sm:$0xff]  ;;  %v298_v58 = vld [vmem:[%s740_s5 + $0x10] sm:$0xff] }
   0xc   :  { %187 = vperm.xlu0 %559, %v169_v10   ;;  %546 = vmatprep.mubr.msk.f32.mxu0 %vm190_vm2, %v296_v40  ;;  %v299_v59 = vld [vmem:[%s740_s5 + $0x18] sm:$0xff]  ;;  %v300_v60 = vld [vmem:[%s740_s5 + $0x20] sm:$0xff]  ;;  %v301_v61 = vld [vmem:[%s740_s5 + $0x28] sm:$0x1f]  ;;  %s561_s5 = scalar_lea.vmem %s466_s28, 768 }
   0xd   :  { %182 = vperm.xlu1 %560, %v168_v11   ;;  %p562_p0 = scmp.ne.s32.totalorder %s466_s28, %s561_s5  ;;  %p567_p2 = scmp.lt.s32.totalorder %s561_s5, %s561_s5 }
   0xf   :  { %p568_p3 = por %p567_p2, %p566_p1 }
  0x10   :  { %177 = vperm.xlu0 %559, %v167_v12  }
  0x11   :  { %172 = vperm.xlu1 %560, %v166_v13   ;;  %p569_p4 = pnand %p568_p3, %p562_p0 }
  0x14   :  { %310 = vperm.xlu0 %559, %v302_v14  }
  0x15   :  { %315 = vperm.xlu1 %560, %v303_v15  }
  0x18   :  { %320 = vperm.xlu0 %559, %v304_v16  }
  0x19   :  { %325 = vperm.xlu1 %560, %v305_v17  }
  0x1c   :  { %330 = vperm.xlu0 %559, %v306_v18  }
  0x1d   :  { %335 = vperm.xlu1 %560, %v307_v19  }
  0x7f   :  { %v54_v21 = vpop.permute.xlu0 %53 }
  0x80   :  { %v44_v23 = vpop.permute.xlu1 %43 }
  0x83   :  { %v49_v27 = vpop.permute.xlu0 %48 }
  0x84   :  { %v39_v32 = vpop.permute.xlu1 %38 }
  0x87   :  { %v188_v41 = vpop.permute.xlu0 %187 }
  0x88   :  { %v183_v43 = vpop.permute.xlu1 %182 }
  0x8b   :  { %v178_v47 = vpop.permute.xlu0 %177 }
  0x8c   :  { %v173_v52 = vpop.permute.xlu1 %172 }
  0x8f   :  { %v311_v63 = vpop.permute.xlu0 %310 }
  0x90   :  { %v316_v62 = vpop.permute.xlu1 %315 }
  0x93   :  { %v321_v5 = vpop.permute.xlu0 %320 }
  0x94   :  { %v326_v2 = vpop.permute.xlu1 %325 }
  0x97   :  { %v331_v13 = vpop.permute.xlu0 %330 }
  0x98   :  { %v336_v10 = vpop.permute.xlu1 %335 }
  0xc4   :  { %v520_v22 = vpop.f32.mrf.mxu1 }
  0xc5   :  { %v145_v29 = vadd.f32 %v520_v22, %v44_v23 }
  0xc6   :  { %v139_v24 = vpop.f32.mrf.mxu1 }
  0xc7   :  { %v140_v33 = vadd.f32 %v139_v24, %v39_v32  ;;  %v159_v35 = vmax.f32 %v145_v29, 0.0 }
  0xc8   :  { %v523_v25 = vpop.f32.mrf.mxu1 }
  0xc9   :  { %v155_v26 = vadd.f32 %v523_v25, %v54_v21  ;;  %v158_v36 = vmax.f32 %v140_v33, 0.0 }
  0xca   :  { %v149_v28 = vpop.f32.mrf.mxu1 }
  0xcb   :  { %v161_v30 = vmax.f32 %v155_v26, 0.0  ;;  %v150_v31 = vadd.f32 %v149_v28, %v49_v27 }
  0xcd   :  { %v160_v34 = vmax.f32 %v150_v31, 0.0  ;;  %524 = vmatprep.subr.msk.mxu1 %vm203_vm3, %v161_v30 }
  0xce   :  { %525 = vmatpush3.msk.msra.mxu1 %vm203_vm3, %v161_v30 }
  0xcf   :  { %526 = vmatprep.subr.mxu1 %v160_v34 }
  0xd0   :  { %527 = vmatpush3.msra.mxu1 %v160_v34 }
  0xd1   :  { %528 = vmatprep.subr.mxu1 %v159_v35 }
  0xd2   :  { %529 = vmatpush3.msra.mxu1 %v159_v35 }
  0xd3   :  { %530 = vmatprep.subr.mxu1 %v158_v36 }
  0xd4   :  { %531 = vmatpush3.msra.mxu1 %v158_v36 }
  0xd5   :  { %533 = vmatmul.mubr.msk.f32.vlgmr.msra.gmra.mxu1 %vm190_vm2, %v163_v37 }
  0xd6   :  { %535 = vmatprep.mubr.msk.f32.mxu1 %vm190_vm2, %v164_v38 }
  0xd9   :  { %536 = vmatmul.mubr.msk.f32.gmra.mxu1 %vm190_vm2, %v165_v39 }
 0x195   :  { %v534_v42 = vpop.f32.mrf.mxu1 }
 0x196   :  { %v279_v49 = vadd.f32 %v534_v42, %v178_v47 }
 0x197   :  { %v273_v44 = vpop.f32.mrf.mxu1 }
 0x198   :  { %v274_v53 = vadd.f32 %v273_v44, %v173_v52  ;;  %v293_v55 = vmax.f32 %v279_v49, 0.0 }
 0x199   :  { %v537_v45 = vpop.f32.mrf.mxu1 }
 0x19a   :  { %v289_v46 = vadd.f32 %v537_v45, %v188_v41  ;;  %v292_v56 = vmax.f32 %v274_v53, 0.0 }
 0x19b   :  { %v283_v48 = vpop.f32.mrf.mxu1 }
 0x19c   :  { %v295_v50 = vmax.f32 %v289_v46, 0.0  ;;  %v284_v51 = vadd.f32 %v283_v48, %v183_v43 }
 0x19e   :  { %v294_v54 = vmax.f32 %v284_v51, 0.0  ;;  %538 = vmatprep.subr.msk.mxu0 %vm203_vm3, %v295_v50 }
 0x19f   :  { %539 = vmatpush3.msk.msra.mxu0 %vm203_vm3, %v295_v50 }
 0x1a0   :  { %540 = vmatprep.subr.mxu0 %v294_v54 }
 0x1a1   :  { %541 = vmatpush3.msra.mxu0 %v294_v54 }
 0x1a2   :  { %542 = vmatprep.subr.mxu0 %v293_v55 }
 0x1a3   :  { %543 = vmatpush3.msra.mxu0 %v293_v55 }
 0x1a4   :  { %544 = vmatprep.subr.mxu0 %v292_v56 }
 0x1a5   :  { %545 = vmatpush3.msra.mxu0 %v292_v56 }
 0x1a6   :  { %547 = vmatmul.mubr.msk.f32.vlgmr.msra.gmra.mxu0 %vm190_vm2, %v297_v57 }
 0x1a7   :  { %549 = vmatprep.mubr.msk.f32.mxu0 %vm190_vm2, %v298_v58 }
 0x1aa   :  { %550 = vmatmul.mubr.msk.f32.gmra.mxu0 %vm190_vm2, %v299_v59 }
 0x1ab   :  { %552 = vmatprep.mubr.msk.f32.mxu0 %vm190_vm2, %v300_v60 }
 0x1ae   :  { %553 = vmatmul.mubr.msk.f32.gmra.mxu0 %vm190_vm2, %v301_v61 }
 0x266   :  { %v548_v0 = vpop.f32.mrf.mxu0 }
 0x267   :  { %v431_v1 = vadd.f32 %v548_v0, %v316_v62 }
 0x268   :  { %v425_v3 = vpop.f32.mrf.mxu0 }
 0x269   :  { %455 = vst [vmem:[#allocation2 + $0x8] sm:$0xff] %v431_v1  ;;  %v426_v4 = vadd.f32 %v425_v3, %v311_v63 }
 0x26a   :  { %v551_v6 = vpop.f32.mrf.mxu0 }
 0x26b   :  { %454 = vst [vmem:[#allocation2] sm:$0xff] %v426_v4  ;;  %v441_v7 = vadd.f32 %v551_v6, %v326_v2 }
 0x26c   :  { %v435_v8 = vpop.f32.mrf.mxu0 }
 0x26d   :  { %457 = vst [vmem:[#allocation2 + $0x18] sm:$0xff] %v441_v7  ;;  %v436_v9 = vadd.f32 %v435_v8, %v321_v5 }
 0x26e   :  { %v554_v11 = vpop.f32.mrf.mxu0 }
 0x26f   :  { %456 = vst [vmem:[#allocation2 + $0x10] sm:$0xff] %v436_v9  ;;  %v451_v12 = vadd.f32 %v554_v11, %v336_v10 }
 0x270   :  { %v445_v14 = vpop.f32.mrf.mxu0 }
 0x271   :  { %459 = vst [vmem:[#allocation2 + $0x28] sm:$0x1f] %v451_v12  ;;  %v446_v15 = vadd.f32 %v445_v14, %v331_v13 }
 0x273   :  { %458 = vst [vmem:[#allocation2 + $0x20] sm:$0xff] %v446_v15 }
 0x274   :  { %572 = shalt.err (!%p569_p4)
}
 0x275   :  { %s585_s29 = smov 128   ;;  %s586_s30 = smov 8  }
 0x276   :  { %471 = dma.vmem_to_hbm [thread:$0]  %s466_s28, 768, %s742_s7, [#allocation3], %s585_s29, %s585_s29, %s586_s30  }
 0x277   :  { %581 = dma.done.wait [#allocation3], 768  }
 0x278   :  { %582 = vsyncadd [#allocation3], 4294966528 }
 0x279   :  { %475 = vsyncpa [#allocation3], 1 }

</bundles_post_ra>
